<compile_context>
chip_gen: v6e
topology: v6e:2x2x1
jax: 0.10.0
libtpu: 0.0.40
codegen_flags: <defaults>
</compile_context>

<pallas_src>
import functools

import jax
import jax.numpy as jnp
from jax.experimental import pallas as pl
from jax.experimental.pallas import tpu as pltpu

_EPS = 1e-8  # PyTorch CosineSimilarity default eps


def _round_up(x, m):
    return ((x + m - 1) // m) * m


def _triplet_loss_kernel(a_ref, p_ref, n_ref, o_ref, acc_ref, *, margin, true_b, tile_b):
    i = pl.program_id(0)

    @pl.when(i == 0)
    def _init():
        acc_ref[...] = jnp.zeros_like(acc_ref)

    # Upcast per tile; all math/accumulation in f32 (required on v5e, safe everywhere).
    a = a_ref[...].astype(jnp.float32)
    p = p_ref[...].astype(jnp.float32)
    n = n_ref[...].astype(jnp.float32)

    # Per-row squared norms and dot products (reduce over feature axis = 1).
    a_sq = jnp.sum(a * a, axis=1, keepdims=True)
    p_sq = jnp.sum(p * p, axis=1, keepdims=True)
    n_sq = jnp.sum(n * n, axis=1, keepdims=True)
    ap = jnp.sum(a * p, axis=1, keepdims=True)
    an = jnp.sum(a * n, axis=1, keepdims=True)

    # cos(x1, x2) = x1.x2 / max(||x1|| * ||x2||, eps)
    cos_ap = ap / jnp.maximum(jnp.sqrt(a_sq * p_sq), _EPS)
    cos_an = an / jnp.maximum(jnp.sqrt(a_sq * n_sq), _EPS)

    pos_dist = 1.0 - cos_ap
    neg_dist = 1.0 - cos_an
    per_row = jnp.maximum(pos_dist - neg_dist + margin, 0.0)  # relu

    # Mask rows that only exist because of batch padding (ragged last tile).
    row = i * tile_b + jax.lax.broadcasted_iota(jnp.int32, per_row.shape, 0)
    per_row = jnp.where(row < true_b, per_row, 0.0)

    # Elementwise (VPU) accumulation across grid steps; single cross-lane
    # reduce deferred to the epilogue.
    acc_ref[...] += per_row

    @pl.when(i == pl.num_programs(0) - 1)
    def _fin():
        o_ref[0, 0] = jnp.sum(acc_ref[...]) * (1.0 / true_b)


def triplet_loss(anchor, positive, negative, margin=1.0, tile_b=None):
    """anchor/positive/negative: (B, D) in f32 or bf16. Returns scalar f32 loss."""
    assert anchor.shape == positive.shape == negative.shape
    assert anchor.ndim == 2
    B, D = anchor.shape
    itemsize = jnp.dtype(anchor.dtype).itemsize

    if tile_b is None:
        # ~12 MiB budget for 3 inputs x 2 pipeline buffers -> fits the default
        # scoped-VMEM limit on v5e (16 MiB) and v6e/v7x (32 MiB).
        budget = 12 * 1024 * 1024
        tile_b = budget // max(3 * 2 * D * itemsize, 1)
        tile_b = max(8, min(1024, (tile_b // 8) * 8))
    # Never use a tile larger than the (sublane-rounded) batch.
    tile_b = min(int(tile_b), _round_up(B, 8))
    tile_b = max(8, (tile_b // 8) * 8)

    b_pad = _round_up(B, tile_b)
    if b_pad != B:
        pad = ((0, b_pad - B), (0, 0))
        anchor = jnp.pad(anchor, pad)
        positive = jnp.pad(positive, pad)
        negative = jnp.pad(negative, pad)

    grid = (b_pad // tile_b,)
    kernel = functools.partial(
        _triplet_loss_kernel, margin=float(margin), true_b=int(B), tile_b=int(tile_b)
    )

    in_spec = pl.BlockSpec((tile_b, D), lambda i: (i, 0))
    cost = pl.CostEstimate(
        flops=10 * B * D,
        transcendentals=2 * B,
        bytes_accessed=3 * B * D * itemsize + 4,
    )

    out = pl.pallas_call(
        kernel,
        out_shape=jax.ShapeDtypeStruct((1, 1), jnp.float32),
        grid=grid,
        in_specs=[in_spec, in_spec, in_spec],
        out_specs=pl.BlockSpec(
            (1, 1), lambda i: (0, 0), memory_space=pltpu.MemorySpace.SMEM
        ),
        scratch_shapes=[pltpu.VMEM((tile_b, 1), jnp.float32)],
        compiler_params=pltpu.CompilerParams(dimension_semantics=("arbitrary",)),
        cost_estimate=cost,
    )(anchor, positive, negative)
    return out[0, 0]


def _triplet_loss_ref(anchor, positive, negative, margin=1.0):
    anchor = anchor.astype(jnp.float32)
    positive = positive.astype(jnp.float32)
    negative = negative.astype(jnp.float32)

    def cos(x1, x2):
        num = jnp.sum(x1 * x2, axis=1)
        den = jnp.maximum(
            jnp.linalg.norm(x1, axis=1) * jnp.linalg.norm(x2, axis=1), _EPS
        )
        return num / den

    pos_d = 1.0 - cos(anchor, positive)
    neg_d = 1.0 - cos(anchor, negative)
    return jnp.mean(jnp.maximum(pos_d - neg_d + margin, 0.0))


if __name__ == "__main__":
    key = jax.random.PRNGKey(0)

    # --- f32, aligned batch (B=8, D=32) -------------------------------------
    B, D = 8, 32
    ka, kp, kn = jax.random.split(key, 3)
    anchor = jax.random.normal(ka, (B, D), dtype=jnp.float32)
    positive = jax.random.normal(kp, (B, D), dtype=jnp.float32)
    negative = jax.random.normal(kn, (B, D), dtype=jnp.float32)

    loss = jax.block_until_ready(triplet_loss(anchor, positive, negative, margin=1.0))
    ref = jax.block_until_ready(_triplet_loss_ref(anchor, positive, negative, margin=1.0))
    assert jnp.allclose(loss, ref, rtol=1e-5, atol=1e-5), (loss, ref)

    # --- f32, ragged batch (B=10) with forced multi-tile grid (tile_b=8) -----
    B2 = 10
    kb = jax.random.split(key, 4)
    a2 = jax.random.normal(kb[0], (B2, D), dtype=jnp.float32)
    p2 = jax.random.normal(kb[1], (B2, D), dtype=jnp.float32)
    n2 = jax.random.normal(kb[2], (B2, D), dtype=jnp.float32)
    loss2 = jax.block_until_ready(triplet_loss(a2, p2, n2, margin=1.0, tile_b=8))
    ref2 = jax.block_until_ready(_triplet_loss_ref(a2, p2, n2, margin=1.0))
    assert jnp.allclose(loss2, ref2, rtol=1e-5, atol=1e-5), (loss2, ref2)

    # --- bf16 inputs (native storage dtype, f32 accumulation in-kernel) ------
    B3 = 16
    a3 = jax.random.normal(kb[3], (B3, D), dtype=jnp.float32).astype(jnp.bfloat16)
    p3 = jax.random.normal(ka, (B3, D), dtype=jnp.float32).astype(jnp.bfloat16)
    n3 = jax.random.normal(kp, (B3, D), dtype=jnp.float32).astype(jnp.bfloat16)
    loss3 = jax.block_until_ready(triplet_loss(a3, p3, n3, margin=0.5))
    ref3 = jax.block_until_ready(_triplet_loss_ref(a3, p3, n3, margin=0.5))
    assert jnp.allclose(loss3, ref3, rtol=1e-4, atol=1e-4), (loss3, ref3)

    print("KERNEL_OK")
</pallas_src>

<mosaic_0001>
module attributes {stable_mosaic.version = 11 : i64} {
  func.func @_triplet_loss_kernel(%arg0: i32, %arg1: memref<8x32xf32, #tpu.memory_space<vmem>>, %arg2: memref<8x32xf32, #tpu.memory_space<vmem>>, %arg3: memref<8x32xf32, #tpu.memory_space<vmem>>, %arg4: memref<1x1xf32, #tpu.memory_space<smem>>, %arg5: memref<8x1xf32, #tpu.memory_space<vmem>>) attributes {dimension_semantics = [#tpu.dimension_semantics<arbitrary>], iteration_bounds = array<i64: 1>, scalar_prefetch = 0 : i64, scratch_operands = 1 : i64, tpu.core_type = #tpu.core_type<tc>, window_params = [{transform_indices = @transform_0, window_bounds = array<i64: 8, 32>}, {transform_indices = @transform_1, window_bounds = array<i64: 8, 32>}, {transform_indices = @transform_2, window_bounds = array<i64: 8, 32>}, {transform_indices = @transform_3, window_bounds = array<i64: 1, 1>}]} {
    %c0_i32 = arith.constant 0 : i32
    %0 = arith.cmpi eq, %arg0, %c0_i32 : i32
    %1 = arith.extui %0 : i1 to i32
    %c0_i32_0 = arith.constant 0 : i32
    %2 = arith.cmpi ne, %1, %c0_i32_0 : i32
    scf.if %2 {
      %cst_24 = arith.constant 0.000000e+00 : f32
      %54 = vector.broadcast %cst_24 : f32 to vector<8x1xf32>
      %c0_25 = arith.constant 0 : index
      %c0_26 = arith.constant 0 : index
      %55 = vector.load %arg5[%c0_25, %c0_26] : memref<8x1xf32, #tpu.memory_space<vmem>>, vector<8x1xf32>
      tpu.vector_store %arg5[%c0_25, %c0_26], %54 {strides = array<i32>} : memref<8x1xf32, #tpu.memory_space<vmem>>, vector<8x1xf32>,
    } else {
    }
    %c0 = arith.constant 0 : index
    %c0_1 = arith.constant 0 : index
    %3 = vector.load %arg1[%c0, %c0_1] : memref<8x32xf32, #tpu.memory_space<vmem>>, vector<8x32xf32>
    %c0_2 = arith.constant 0 : index
    %c0_3 = arith.constant 0 : index
    %4 = vector.load %arg2[%c0_2, %c0_3] : memref<8x32xf32, #tpu.memory_space<vmem>>, vector<8x32xf32>
    %c0_4 = arith.constant 0 : index
    %c0_5 = arith.constant 0 : index
    %5 = vector.load %arg3[%c0_4, %c0_5] : memref<8x32xf32, #tpu.memory_space<vmem>>, vector<8x32xf32>
    %6 = arith.mulf %3, %3 : vector<8x32xf32>
    %cst = arith.constant dense<0.000000e+00> : vector<8xf32>
    %7 = vector.multi_reduction <add>, %6, %cst [1] : vector<8x32xf32> to vector<8xf32>
    %8 = vector.shape_cast %7 : vector<8xf32> to vector<8x1xf32>
    %9 = arith.mulf %4, %4 : vector<8x32xf32>
    %cst_6 = arith.constant dense<0.000000e+00> : vector<8xf32>
    %10 = vector.multi_reduction <add>, %9, %cst_6 [1] : vector<8x32xf32> to vector<8xf32>
    %11 = vector.shape_cast %10 : vector<8xf32> to vector<8x1xf32>
    %12 = arith.mulf %5, %5 : vector<8x32xf32>
    %cst_7 = arith.constant dense<0.000000e+00> : vector<8xf32>
    %13 = vector.multi_reduction <add>, %12, %cst_7 [1] : vector<8x32xf32> to vector<8xf32>
    %14 = vector.shape_cast %13 : vector<8xf32> to vector<8x1xf32>
    %15 = arith.mulf %3, %4 : vector<8x32xf32>
    %cst_8 = arith.constant dense<0.000000e+00> : vector<8xf32>
    %16 = vector.multi_reduction <add>, %15, %cst_8 [1] : vector<8x32xf32> to vector<8xf32>
    %17 = vector.shape_cast %16 : vector<8xf32> to vector<8x1xf32>
    %18 = arith.mulf %3, %5 : vector<8x32xf32>
    %cst_9 = arith.constant dense<0.000000e+00> : vector<8xf32>
    %19 = vector.multi_reduction <add>, %18, %cst_9 [1] : vector<8x32xf32> to vector<8xf32>
    %20 = vector.shape_cast %19 : vector<8xf32> to vector<8x1xf32>
    %21 = arith.mulf %8, %11 : vector<8x1xf32>
    %22 = math.sqrt %21 : vector<8x1xf32>
    %cst_10 = arith.constant 9.99999993E-9 : f32
    %23 = vector.broadcast %cst_10 : f32 to vector<8x1xf32>
    %24 = arith.maximumf %22, %23 : vector<8x1xf32>
    %25 = arith.divf %17, %24 : vector<8x1xf32>
    %26 = arith.mulf %8, %14 : vector<8x1xf32>
    %27 = math.sqrt %26 : vector<8x1xf32>
    %cst_11 = arith.constant 9.99999993E-9 : f32
    %28 = vector.broadcast %cst_11 : f32 to vector<8x1xf32>
    %29 = arith.maximumf %27, %28 : vector<8x1xf32>
    %30 = arith.divf %20, %29 : vector<8x1xf32>
    %cst_12 = arith.constant 1.000000e+00 : f32
    %31 = vector.broadcast %cst_12 : f32 to vector<8x1xf32>
    %32 = arith.subf %31, %25 : vector<8x1xf32>
    %cst_13 = arith.constant 1.000000e+00 : f32
    %33 = vector.broadcast %cst_13 : f32 to vector<8x1xf32>
    %34 = arith.subf %33, %30 : vector<8x1xf32>
    %35 = arith.subf %32, %34 : vector<8x1xf32>
    %cst_14 = arith.constant 1.000000e+00 : f32
    %36 = vector.broadcast %cst_14 : f32 to vector<8x1xf32>
    %37 = arith.addf %35, %36 : vector<8x1xf32>
    %cst_15 = arith.constant 0.000000e+00 : f32
    %38 = vector.broadcast %cst_15 : f32 to vector<8x1xf32>
    %39 = arith.maximumf %37, %38 : vector<8x1xf32>
    %c8_i32 = arith.constant 8 : i32
    %40 = arith.muli %arg0, %c8_i32 : i32
    %41 = tpu.iota {dimensions = array<i32: 0>} : vector<8x1xi32>
    %42 = vector.broadcast %40 : i32 to vector<8x1xi32>
    %43 = arith.addi %42, %41 : vector<8x1xi32>
    %c8_i32_16 = arith.constant 8 : i32
    %44 = vector.broadcast %c8_i32_16 : i32 to vector<8x1xi32>
    %45 = arith.cmpi slt, %43, %44 : vector<8x1xi32>
    %cst_17 = arith.constant 0.000000e+00 : f32
    %46 = vector.broadcast %cst_17 : f32 to vector<8x1xf32>
    %47 = arith.select %45, %39, %46 : vector<8x1xi1>, vector<8x1xf32>
    %c0_18 = arith.constant 0 : index
    %c0_19 = arith.constant 0 : index
    %48 = vector.load %arg5[%c0_18, %c0_19] : memref<8x1xf32, #tpu.memory_space<vmem>>, vector<8x1xf32>
    %49 = arith.addf %48, %47 : vector<8x1xf32>
    %c0_20 = arith.constant 0 : index
    %c0_21 = arith.constant 0 : index
    %50 = vector.load %arg5[%c0_20, %c0_21] : memref<8x1xf32, #tpu.memory_space<vmem>>, vector<8x1xf32>
    tpu.vector_store %arg5[%c0_20, %c0_21], %49 {strides = array<i32>} : memref<8x1xf32, #tpu.memory_space<vmem>>, vector<8x1xf32>,
    %c0_i32_22 = arith.constant 0 : i32
    %51 = arith.cmpi eq, %arg0, %c0_i32_22 : i32
    %52 = arith.extui %51 : i1 to i32
    %c0_i32_23 = arith.constant 0 : i32
    %53 = arith.cmpi ne, %52, %c0_i32_23 : i32
    scf.if %53 {
      %c0_24 = arith.constant 0 : index
      %c0_25 = arith.constant 0 : index
      %54 = vector.load %arg5[%c0_24, %c0_25] : memref<8x1xf32, #tpu.memory_space<vmem>>, vector<8x1xf32>
      %55 = vector.shape_cast %54 : vector<8x1xf32> to vector<1x8x1xf32>
      %cst_26 = arith.constant dense<0.000000e+00> : vector<1xf32>
      %56 = vector.multi_reduction <add>, %55, %cst_26 [1, 2] : vector<1x8x1xf32> to vector<1xf32>
      %57 = vector.shape_cast %56 : vector<1xf32> to vector<1x1x1xf32>
      %58 = vector.extract %57[0, 0, 0] : f32 from vector<1x1x1xf32>
      %cst_27 = arith.constant 1.250000e-01 : f32
      %59 = arith.mulf %58, %cst_27 : f32
      %c0_28 = arith.constant 0 : index
      %c0_29 = arith.constant 0 : index
      %60 = memref.load %arg4[%c0_28, %c0_29] : memref<1x1xf32, #tpu.memory_space<smem>>
      memref.store %59, %arg4[%c0_28, %c0_29] : memref<1x1xf32, #tpu.memory_space<smem>>
    } else {
    }
    return
  }
  func.func @transform_0(%arg0: i32) -> (i32, i32) {
    %c0_i32 = arith.constant 0 : i32
    %c0_i32_0 = arith.constant 0 : i32
    return %arg0, %c0_i32 : i32, i32
  }
  func.func @transform_1(%arg0: i32) -> (i32, i32) {
    %c0_i32 = arith.constant 0 : i32
    %c0_i32_0 = arith.constant 0 : i32
    return %arg0, %c0_i32 : i32, i32
  }
  func.func @transform_2(%arg0: i32) -> (i32, i32) {
    %c0_i32 = arith.constant 0 : i32
    %c0_i32_0 = arith.constant 0 : i32
    return %arg0, %c0_i32 : i32, i32
  }
  func.func @transform_3(%arg0: i32) -> (i32, i32) {
    %c0_i32 = arith.constant 0 : i32
    %c0_i32_0 = arith.constant 0 : i32
    %c0_i32_1 = arith.constant 0 : i32
    return %c0_i32, %c0_i32_0 : i32, i32
  }
}

</mosaic_0001>

<bundles_post_ra>
// kernel: tpu_custom_call.1
= control target key start
LH: loop header
LB: loop body
LE: loop exit
PB: predicated region body
PF: predicated region fallthrough
CT: control target
= control target key end

     0   :  { %8 = vsyncpa [#allocation4], 0  ;;  %s284_s0 = inlined_call_operand.hbm [shape: f32[8,32], index: 0, kind: input, shape index: {}]   ;;  %s285_s1 = inlined_call_operand.hbm [shape: f32[8,32], index: 1, kind: input, shape index: {}]   ;;  %s286_s2 = inlined_call_operand.hbm [shape: f32[8,32], index: 2, kind: input, shape index: {}]   ;;  %s287_s3 = inlined_call_operand.hbm [shape: f32[1,1], index: 3, kind: output, shape index: {}]  }
   0x1   :  { %9 = vsyncpa [#allocation7], 0 }
   0x2   :  { %10 = vsyncpa [#allocation5], 0  ;;  %s239_s12 = smov [#allocation6]   ;;  %s240_s14 = smov [#allocation3]  }
   0x3   :  { %s27_s13 = sshll.u32 %s239_s12, 4  ;;  %s17_s15 = sshll.u32 %s240_s14, 4  ;;  %s28_s13 = int_to_ptr.vmem [resolvable:$true] %s27_s13  ;;  %s18_s15 = int_to_ptr.vmem [resolvable:$true] %s17_s15 }
   0x4   :  { %s173_s16 = scalar_lea.vmem %s28_s13, 128  ;;  %p178_p1 = scmp.lt.s32.totalorder %s28_s13, %s28_s13 }
   0x5   :  { %p174_p0 = scmp.ne.s32.totalorder %s28_s13, %s173_s16  ;;  %p179_p2 = scmp.lt.s32.totalorder %s173_s16, %s173_s16 }
   0x7   :  { %p180_p3 = por %p179_p2, %p178_p1 }
   0x9   :  { %p181_p4 = pnand %p180_p3, %p174_p0 }
   0xb   :  { %184 = shalt.err (!%p181_p4)
}
   0xc   :  { %30 = dma.hbm_to_vmem [thread:$0]  %s285_s1, 128, %s28_s13, [#allocation7]  }
   0xd   :  { %s193_s19 = scalar_lea.vmem %s18_s15, 128  ;;  %p198_p6 = scmp.lt.s32.totalorder %s18_s15, %s18_s15 }
   0xe   :  { %p194_p5 = scmp.ne.s32.totalorder %s18_s15, %s193_s19  ;;  %p199_p7 = scmp.lt.s32.totalorder %s193_s19, %s193_s19 }
  0x10   :  { %p200_p8 = por %p199_p7, %p198_p6 }
  0x12   :  { %p201_p9 = pnand %p200_p8, %p194_p5 }
  0x14   :  { %204 = shalt.err (!%p201_p9)
}
  0x15   :  { %20 = dma.hbm_to_vmem [thread:$0]  %s284_s0, 128, %s18_s15, [#allocation4]  }
  0x16   :  { %s241_s22 = smov [#allocation8]  }
  0x17   :  { %s37_s23 = sshll.u32 %s241_s22, 4  ;;  %s38_s23 = int_to_ptr.vmem [resolvable:$true] %s37_s23 }
  0x18   :  { %s213_s24 = scalar_lea.vmem %s38_s23, 128  ;;  %p218_p11 = scmp.lt.s32.totalorder %s38_s23, %s38_s23 }
  0x19   :  { %p214_p10 = scmp.ne.s32.totalorder %s38_s23, %s213_s24  ;;  %p219_p12 = scmp.lt.s32.totalorder %s213_s24, %s213_s24 }
  0x1b   :  { %p220_p13 = por %p219_p12, %p218_p11 }
  0x1d   :  { %p221_p0 = pnand %p220_p13, %p214_p10 }
  0x1f   :  { %224 = shalt.err (!%p221_p0)
}
  0x20   :  { %40 = dma.hbm_to_vmem [thread:$0]  %s286_s2, 128, %s38_s23, [#allocation7]  }
  0x21   :  { %233 = dma.done.wait [#allocation4], 128  }
  0x22   :  { %234 = vsyncadd [#allocation4], 4294967168 }
  0x23   :  { %235 = dma.done.wait [#allocation7], 256  }
  0x24   :  { %236 = vsyncadd [#allocation7], 4294967040  ;;  %v58_v0 = vld [vmem:[#allocation8] sm:$0xff]  ;;  %vm60_vm0 = vcmask 261120   ;;  %v56_v1 = vld [vmem:[#allocation3] sm:$0xff]  ;;  %vm54_vm1 = vcmask 7168  }
  0x25   :  { %v57_v2 = vld [vmem:[#allocation6] sm:$0xff]  ;;  %v68_v3 = vmul.f32 %v58_v0, %v58_v0  ;;  %v59_v4 = vmul.f32 %v56_v1, %v56_v1  ;;  %v76_v10 = vmul.f32 %v58_v0, %v56_v1  ;;  %v242_v13 = vmov 0.0   ;;  %s243_s26 = smov [#allocation9]  }
  0x26   :  { %v64_v5 = vmul.f32 %v57_v2, %v57_v2  ;;  %v72_v6 = vmul.f32 %v57_v2, %v56_v1  ;;  %55 = vst.msk [vmem:[#allocation2] sm:$0xff] %vm54_vm1, %v242_v13 }
  0x27   :  { %v69_v7 = vsel %vm60_vm0, %v68_v3, 0.0  ;;  %v61_v8 = vsel %vm60_vm0, %v59_v4, 0.0  ;;  %v77_v12 = vsel %vm60_vm0, %v76_v10, 0.0 }
  0x28   :  { %70 = vadd.xlane.f32.xlu1 %v69_v7  ;;  %62 = vadd.xlane.f32.xlu0 %v61_v8  ;;  %v65_v9 = vsel %vm60_vm0, %v64_v5, 0.0  ;;  %v73_v11 = vsel %vm60_vm0, %v72_v6, 0.0 }
  0x2c   :  { %66 = vadd.xlane.f32.xlu0 %v65_v9  ;;  %74 = vadd.xlane.f32.xlu1 %v73_v11 }
  0x2d   :  { %v114_v41 = vld [vmem:[#allocation2] sm:$0xff] }
  0x30   :  { %78 = vadd.xlane.f32.xlu0 %v77_v12 }
  0xb1   :  { %v71_v14 = vpop.xlane.xlu1 %70  ;;  %v63_v15 = vpop.xlane.xlu0 %62 }
  0xb2   :  { %v91_v16 = vmul.f32 %v71_v14, %v63_v15 }
  0xb4   :  { %157 = vrsqrt.f32 %v91_v16  ;;  %vm94_vm2 = vcmp.eq.f32.partialorder %v91_v16, inf  ;;  %v97_v21 = vand.u32 2147483648, %v91_v16  ;;  %vm96_vm3 = vcmp.eq.f32.partialorder %v91_v16, 0.0 }
  0xb5   :  { %v67_v17 = vpop.xlane.xlu0 %66  ;;  %v75_v33 = vpop.xlane.xlu1 %74 }
  0xb6   :  { %v80_v18 = vmul.f32 %v67_v17, %v63_v15 }
  0xb8   :  { %159 = vrsqrt.f32 %v80_v18  ;;  %vm83_vm4 = vcmp.eq.f32.partialorder %v80_v18, inf  ;;  %v86_v27 = vand.u32 2147483648, %v80_v18  ;;  %vm85_vm5 = vcmp.eq.f32.partialorder %v80_v18, 0.0 }
  0xb9   :  { %v79_v32 = vpop.xlane.xlu0 %78 }
  0xc1   :  { %v158_v19 = vpop.eup %157 }
  0xc2   :  { %v93_v20 = vmul.f32 %v158_v19, %v91_v16 }
  0xc4   :  { %v95_v22 = vsel %vm94_vm2, %v91_v16, %v93_v20 }
  0xc5   :  { %v160_v23 = vpop.eup %159  ;;  %v98_v24 = vsel %vm96_vm3, %v97_v21, %v95_v22 }
  0xc6   :  { %v82_v25 = vmul.f32 %v160_v23, %v80_v18  ;;  %v99_v26 = vmax.f32 %v98_v24, 1e-08 }
  0xc8   :  { %161 = vrcp.f32 %v99_v26  ;;  %v84_v28 = vsel %vm83_vm4, %v80_v18, %v82_v25 }
  0xc9   :  { %v87_v29 = vsel %vm85_vm5, %v86_v27, %v84_v28 }
  0xca   :  { %v88_v30 = vmax.f32 %v87_v29, 1e-08 }
  0xcc   :  { %163 = vrcp.f32 %v88_v30 }
  0xd5   :  { %v162_v31 = vpop.eup %161 }
  0xd6   :  { %v101_v34 = vmul.f32 %v162_v31, %v79_v32 }
  0xd8   :  { %v103_v37 = vsub.f32 1.0, %v101_v34 }
  0xd9   :  { %v164_v35 = vpop.eup %163 }
  0xda   :  { %v90_v36 = vmul.f32 %v164_v35, %v75_v33 }
  0xdc   :  { %v102_v38 = vsub.f32 1.0, %v90_v36 }
  0xde   :  { %v104_v39 = vsub.f32 %v102_v38, %v103_v37 }
  0xe0   :  { %v105_v40 = vadd.f32 1.0, %v104_v39 }
  0xe2   :  { %v106_v42 = vmax.f32 %v105_v40, 0.0 }
  0xe4   :  { %v115_v43 = vadd.f32 %v114_v41, %v106_v42 }
  0xe6   :  { %117 = vst.msk [vmem:[#allocation2] sm:$0xff] %vm54_vm1, %v115_v43 }
  0xed   :  { %v121_v44 = vld [vmem:[#allocation2] sm:$0xff] }
  0xee   :  { %v122_v45 = vsel %vm54_vm1, %v121_v44, 0.0 }
  0xef   :  { %123 = vadd.xlane.f32.xlu1 %v122_v45 }
 0x178   :  { %v124_v46 = vpop.xlane.xlu1 %123 }
 0x179   :  { %v125_v47 = vrot.slane %v124_v46, 4 }
 0x17b   :  { %v126_v48 = vadd.f32 %v125_v47, %v124_v46 }
 0x17d   :  { %v127_v49 = vrot.slane %v126_v48, 2 }
 0x17f   :  { %v128_v50 = vadd.f32 %v127_v49, %v126_v48 }
 0x181   :  { %v129_v51 = vrot.slane %v128_v50, 1 }
 0x183   :  { %v130_v52 = vadd.f32 %v129_v51, %v128_v50 }
 0x185   :  { %150 = vpush %v130_v52 }
 0x1b6   :  { %s151_s0 = spop %150 }
 0x1b7   :  { %s132_s2 = smul.f32 0.125, %s151_s0 }
 0x1b9   :  { %134 = sst [smem:[#allocation9]] %s132_s2 }
 0x1ba   :  { %142 = dma.smem_to_hbm %s243_s26, 16, %s287_s3, [#allocation5]  }
 0x1bb   :  { %237 = dma.done.wait [#allocation5], 16  }
 0x1bc   :  { %238 = vsyncadd [#allocation5], 4294967280 }
 0x1bd   :  { %146 = sfence }
 0x1be   :  { %147 = vsyncpa [#allocation4], 1 }
 0x1bf   :  { %148 = vsyncpa [#allocation7], 1 }
 0x1c0   :  { %149 = vsyncpa [#allocation5], 1 }

</bundles_post_ra>
